<compile_context>
chip_gen: v5e
topology: v5e:2x2
jax: 0.10.0
libtpu: 0.0.40
codegen_flags: <defaults>
</compile_context>

<pallas_src>
import functools
import math

import jax
import jax.numpy as jnp
from jax.experimental import pallas as pl
from jax.experimental.pallas import tpu as pltpu

_ONE_HOT_MAX_VOCAB = 1024               # MXU one-hot gather up to this vocab size
_VMEM_BUDGET_BYTES = 48 * 1024 * 1024   # conservative: v7x has 64 MiB physical VMEM


def _round_up(x, m):
    return (x + m - 1) // m * m


def _maybe_dropout(y, seed_ref, dropout_rate, training):
    """Inverted dropout using the on-chip PRNG (identity in eval mode)."""
    if not training or dropout_rate <= 0.0:
        return y
    pltpu.prng_seed(seed_ref[0], pl.program_id(0), pl.program_id(1))
    bits = pltpu.bitcast(pltpu.prng_random_bits(y.shape), jnp.uint32)
    thresh = jnp.uint32(min(int(dropout_rate * 4294967296.0), 4294967295))
    keep = bits >= thresh                       # P(keep) = 1 - dropout_rate
    scale = jnp.float32(1.0 / (1.0 - dropout_rate))
    return jnp.where(keep, y * scale, jnp.float32(0.0))


def _onehot_kernel(ids_ref, emb_ref, pe_ref, seed_ref, out_ref, *,
                   dropout_rate, training):
    # ids_ref: (TS, 1) int32   emb_ref: (V, D) VMEM-resident
    # pe_ref:  (TS, D)         out_ref: (TS, D)  (batch dim squeezed)
    ts, _ = out_ref.shape
    v = emb_ref.shape[0]
    onehot = (ids_ref[...] ==
              jax.lax.broadcasted_iota(jnp.int32, (ts, v), 1)).astype(emb_ref.dtype)
    gathered = jnp.dot(onehot, emb_ref[...],
                       precision=jax.lax.Precision.HIGHEST,
                       preferred_element_type=jnp.float32)
    y = gathered + pe_ref[...].astype(jnp.float32)
    y = _maybe_dropout(y, seed_ref, dropout_rate, training)
    out_ref[...] = y.astype(out_ref.dtype)


def _loop_gather_kernel(ids_smem, emb_ref, pe_ref, seed_ref, out_ref, *,
                        dropout_rate, training):
    # ids_smem: (B, S_pad) int32 scalar-prefetched into SMEM
    # emb_ref:  (V, D) VMEM-resident   pe_ref/out_ref: (TS, D)
    ts, _ = out_ref.shape
    b = pl.program_id(0)
    base = pl.program_id(1) * ts

    def gather_row(t, carry):
        tok = ids_smem[b, base + t]
        out_ref[pl.ds(t, 1), :] = emb_ref[pl.ds(tok, 1), :]
        return carry

    jax.lax.fori_loop(0, ts, gather_row, 0, unroll=8)

    y = out_ref[...].astype(jnp.float32) + pe_ref[...].astype(jnp.float32)
    y = _maybe_dropout(y, seed_ref, dropout_rate, training)
    out_ref[...] = y.astype(out_ref.dtype)


@functools.partial(jax.jit, static_argnames=("dropout_rate", "training"))
def decoder_positional_encoding(ids, emb_table, pe, *, rng_seed=0,
                                dropout_rate=0.1, training=False):
    """Pallas forward of DecoderPositionalEncoding.

    ids:       (B, S) integer token ids
    emb_table: (V, D) embedding weights (padding_idx row zeroed, like nn.Embedding)
    pe:        (L, D) or (1, L, D) positional encoding with L >= S
    returns:   (B, S, D)
    """
    B, S = ids.shape
    V, D = emb_table.shape
    pe2 = pe[0] if pe.ndim == 3 else pe
    L = pe2.shape[0]
    assert pe2.shape == (L, D) and L >= S, "positional encoding too short"

    TS = min(256, _round_up(S, 8))          # tokens per grid step (sublane-dense)
    S_pad = _round_up(S, TS)
    grid = (B, S_pad // TS)

    itemsize = jnp.dtype(emb_table.dtype).itemsize
    tile_bytes = TS * D * 4
    vmem_needed = V * D * itemsize + 4 * tile_bytes + (2 << 20)
    if vmem_needed > _VMEM_BUDGET_BYTES:
        # TODO(synk): HBM-resident table + per-token make_async_copy gather path.
        raise NotImplementedError(
            f"embedding table ({V}x{D}) too large for VMEM-resident gather")
    vmem_limit = int(min(max(vmem_needed + (4 << 20), 32 << 20), 64 << 20))

    ids32 = ids if ids.dtype == jnp.int32 else ids.astype(jnp.int32)
    if S_pad != S:
        ids32 = jnp.pad(ids32, ((0, 0), (0, S_pad - S)))

    pe_used = pe2[:S].astype(emb_table.dtype)
    if S_pad != S:
        pe_used = jnp.pad(pe_used, ((0, S_pad - S), (0, 0)))

    seed_arr = jnp.asarray(rng_seed, jnp.int32).reshape((1,))

    compiler_params = pltpu.CompilerParams(
        dimension_semantics=("parallel", "parallel"),
        vmem_limit_bytes=vmem_limit)
    out_shape = jax.ShapeDtypeStruct((B, S_pad, D), emb_table.dtype)
    kern_kw = dict(dropout_rate=float(dropout_rate), training=bool(training))

    if V <= _ONE_HOT_MAX_VOCAB:
        # Small vocab: one-hot gather on the MXU; ids enter as a (TS, 1) column.
        out = pl.pallas_call(
            functools.partial(_onehot_kernel, **kern_kw),
            out_shape=out_shape,
            grid=grid,
            in_specs=[
                pl.BlockSpec((None, TS, 1), lambda b, sb: (b, sb, 0)),   # ids
                pl.BlockSpec((V, D), lambda b, sb: (0, 0)),              # table (resident)
                pl.BlockSpec((TS, D), lambda b, sb: (sb, 0)),            # pe tile
                pl.BlockSpec(memory_space=pltpu.MemorySpace.SMEM),       # seed
            ],
            out_specs=pl.BlockSpec((None, TS, D), lambda b, sb: (b, sb, 0)),
            compiler_params=compiler_params,
        )(ids32[..., None], emb_table, pe_used, seed_arr)
    else:
        # Larger vocab: ids scalar-prefetched to SMEM, dynamic-row gather loop
        # from the VMEM-resident table.
        out = pl.pallas_call(
            functools.partial(_loop_gather_kernel, **kern_kw),
            out_shape=out_shape,
            grid_spec=pltpu.PrefetchScalarGridSpec(
                num_scalar_prefetch=1,
                grid=grid,
                in_specs=[
                    pl.BlockSpec((V, D), lambda b, sb, ids: (0, 0)),     # table
                    pl.BlockSpec((TS, D), lambda b, sb, ids: (sb, 0)),   # pe tile
                    pl.BlockSpec(memory_space=pltpu.MemorySpace.SMEM),   # seed
                ],
                out_specs=pl.BlockSpec((None, TS, D),
                                       lambda b, sb, ids: (b, sb, 0)),
            ),
            compiler_params=compiler_params,
        )(ids32, emb_table, pe_used, seed_arr)

    if S_pad != S:
        out = out[:, :S, :]
    return out


def make_sinusoidal_pe(max_len, d_model, dtype=jnp.float32):
    pos = jnp.arange(max_len, dtype=jnp.float32)[:, None]
    i2 = jnp.arange(0, d_model, 2, dtype=jnp.float32)[None, :]
    div = jnp.exp(-i2 * (math.log(10000.0) / d_model))
    pe_arr = jnp.zeros((max_len, d_model), jnp.float32)
    pe_arr = pe_arr.at[:, 0::2].set(jnp.sin(pos * div))
    pe_arr = pe_arr.at[:, 1::2].set(jnp.cos(pos * div))
    return pe_arr.astype(dtype)


if __name__ == "__main__":
    PAD_IDX = 1

    def run_case(name, key, *, B, S, V, D, max_len):
        k_emb, k_ids = jax.random.split(key)
        emb_table = jax.random.normal(k_emb, (V, D), dtype=jnp.float32)
        emb_table = emb_table.at[PAD_IDX].set(0.0)   # nn.Embedding padding_idx row
        pe = make_sinusoidal_pe(max_len, D)
        ids = jax.random.randint(k_ids, (B, S), 0, V, dtype=jnp.int32)

        out = decoder_positional_encoding(ids, emb_table, pe,
                                          dropout_rate=0.1, training=False)
        out = jax.block_until_ready(out)

        ref = emb_table[ids] + pe[None, :S, :]       # eval-mode dropout == identity
        assert out.shape == (B, S, D), name
        assert jnp.allclose(out, ref, atol=1e-6, rtol=1e-6), f"{name}: mismatch"

    k1, k2 = jax.random.split(jax.random.PRNGKey(0))
    # Small vocab / small hidden -> one-hot MXU gather path.
    run_case("one-hot-gather", k1, B=2, S=8, V=32, D=32, max_len=16)
    # Larger vocab, S not a multiple of 8 -> loop-gather path + padding/slicing.
    run_case("loop-gather", k2, B=2, S=37, V=2000, D=128, max_len=64)

    print("KERNEL_OK")
</pallas_src>

<mosaic_0001>
module attributes {stable_mosaic.version = 11 : i64} {
  func.func @_onehot_kernel(%arg0: i32, %arg1: i32, %arg2: memref<1x8x1xi32, #tpu.memory_space<vmem>>, %arg3: memref<32x32xf32, #tpu.memory_space<vmem>>, %arg4: memref<8x32xf32, #tpu.memory_space<vmem>>, %arg5: memref<1xi32, #tpu.memory_space<smem>>, %arg6: memref<1x8x32xf32, #tpu.memory_space<vmem>>) attributes {dimension_semantics = [#tpu.dimension_semantics<parallel>, #tpu.dimension_semantics<parallel>], iteration_bounds = array<i64: 2, 1>, scalar_prefetch = 0 : i64, scratch_operands = 0 : i64, tpu.core_type = #tpu.core_type<tc>, window_params = [{transform_indices = @transform_0, window_bounds = array<i64: 1, 8, 1>}, {pipeline_mode = #tpu.pipeline_mode<synchronous>, transform_indices = @transform_1, window_bounds = array<i64: 32, 32>}, {transform_indices = @transform_2, window_bounds = array<i64: 8, 32>}, {transform_indices = @transform_3, window_bounds = array<i64: 1>}, {transform_indices = @transform_4, window_bounds = array<i64: 1, 8, 32>}]} {
    %c0 = arith.constant 0 : index
    %c0_0 = arith.constant 0 : index
    %c0_1 = arith.constant 0 : index
    %0 = vector.load %arg2[%c0, %c0_0, %c0_1] : memref<1x8x1xi32, #tpu.memory_space<vmem>>, vector<1x8x1xi32>
    %1 = vector.shape_cast %0 : vector<1x8x1xi32> to vector<8x1xi32>
    %2 = tpu.iota {dimensions = array<i32: 1>} : vector<8x32xi32>
    %3 = vector.broadcast %1 : vector<8x1xi32> to vector<8x32xi32>
    %4 = arith.cmpi eq, %3, %2 : vector<8x32xi32>
    %5 = arith.extui %4 : vector<8x32xi1> to vector<8x32xi32>
    %6 = arith.sitofp %5 : vector<8x32xi32> to vector<8x32xf32>
    %c0_2 = arith.constant 0 : index
    %c0_3 = arith.constant 0 : index
    %7 = vector.load %arg3[%c0_2, %c0_3] : memref<32x32xf32, #tpu.memory_space<vmem>>, vector<32x32xf32>
    %cst = arith.constant dense<0.000000e+00> : vector<8x32xf32>
    %8 = tpu.matmul %6, %7, %cst {dimension_numbers = #tpu.dot_dimension_numbers<[1], [0], [0], [1], [0, 0, 1, 1], [], []>, precision = #tpu.contract_precision<fp32>} : vector<8x32xf32>, vector<32x32xf32>, vector<8x32xf32> -> vector<8x32xf32>
    %c0_4 = arith.constant 0 : index
    %c0_5 = arith.constant 0 : index
    %9 = vector.load %arg4[%c0_4, %c0_5] : memref<8x32xf32, #tpu.memory_space<vmem>>, vector<8x32xf32>
    %10 = arith.addf %8, %9 : vector<8x32xf32>
    %c0_6 = arith.constant 0 : index
    %c0_7 = arith.constant 0 : index
    %c0_8 = arith.constant 0 : index
    %11 = vector.load %arg6[%c0_6, %c0_7, %c0_8] : memref<1x8x32xf32, #tpu.memory_space<vmem>>, vector<1x8x32xf32>
    %12 = vector.shape_cast %11 : vector<1x8x32xf32> to vector<8x32xf32>
    %13 = vector.shape_cast %10 : vector<8x32xf32> to vector<1x8x32xf32>
    tpu.vector_store %arg6[%c0_6, %c0_7, %c0_8], %13 {strides = array<i32>} : memref<1x8x32xf32, #tpu.memory_space<vmem>>, vector<1x8x32xf32>,
    return
  }
  func.func @transform_0(%arg0: i32, %arg1: i32) -> (i32, i32, i32) {
    %c0_i32 = arith.constant 0 : i32
    %c0_i32_0 = arith.constant 0 : i32
    return %arg0, %arg1, %c0_i32 : i32, i32, i32
  }
  func.func @transform_1(%arg0: i32, %arg1: i32) -> (i32, i32) {
    %c0_i32 = arith.constant 0 : i32
    %c0_i32_0 = arith.constant 0 : i32
    %c0_i32_1 = arith.constant 0 : i32
    return %c0_i32, %c0_i32_0 : i32, i32
  }
  func.func @transform_2(%arg0: i32, %arg1: i32) -> (i32, i32) {
    %c0_i32 = arith.constant 0 : i32
    %c0_i32_0 = arith.constant 0 : i32
    return %arg1, %c0_i32 : i32, i32
  }
  func.func @transform_3(%arg0: i32, %arg1: i32) -> i32 {
    %c0_i32 = arith.constant 0 : i32
    %c0_i32_0 = arith.constant 0 : i32
    return %c0_i32 : i32
  }
  func.func @transform_4(%arg0: i32, %arg1: i32) -> (i32, i32, i32) {
    %c0_i32 = arith.constant 0 : i32
    %c0_i32_0 = arith.constant 0 : i32
    return %arg0, %arg1, %c0_i32 : i32, i32, i32
  }
}

</mosaic_0001>

<bundles_post_ra>
// kernel: decoder_positional_encoding.1
= control target key start
LH: loop header
LB: loop body
LE: loop exit
PB: predicated region body
PF: predicated region fallthrough
CT: control target
= control target key end

     0   :  { %10 = vsyncpa [#allocation4], 0  ;;  %s913_s0 = inlined_call_operand.vmem [shape: s32[2,8,1], index: 0, kind: input, shape index: {}]   ;;  %s914_s1 = inlined_call_operand.hbm [shape: f32[32,32], index: 1, kind: input, shape index: {}]   ;;  %s915_s2 = inlined_call_operand.vmem [shape: f32[8,32], index: 2, kind: input, shape index: {}]   ;;  %s916_s3 = inlined_call_operand.<no memory space> [shape: s32[1], index: 3, kind: input, shape index: {}]   ;;  %s917_s4 = inlined_call_operand.hbm [shape: f32[2,8,32], index: 4, kind: output, shape index: {}]  }
   0x1   :  { %11 = vsyncpa [#allocation5], 0 }
   0x2   :  { %13 = vsyncpa [#allocation5 + $0x1], 0  ;;  %s805_s15 = smov 0   ;;  %s807_s16 = smov 0  }
   0x3   :  { %s809_s17 = smov 0   ;;  %s811_s18 = smov 0  }
   0x4   :  { %s813_s19 = smov 0   ;;  %s815_s20 = smov 0  }
   0x5 LB: > { %s572_s3 = sadd.s32 4294967295, %s773_s20   ;;  %s573_s21 = sadd.s32 4294967294, %s773_s20   ;;  %s773_s20 = sphi %s815_s20, %s19_s20   ;;  %s769_s19 = sphi %s813_s19, %s924_s19   ;;  %s765_s18 = sphi %s811_s18, %s923_s18   ;;  %s761_s17 = sphi %s809_s17, %s922_s17   ;;  %s757_s16 = sphi %s807_s16, %s921_s16   ;;  %s753_s15 = sphi %s805_s15, %s920_s15  }
   0x6   : > { %s31_s22 = sadd.s32 1, %s769_s19  ;;  %s136_s23 = sadd.s32 1, %s761_s17 }
   0x7   : > { %p33_p0 = scmp.ge.s32.totalorder %s31_s22, 2  ;;  %p146_p1 = scmp.ne.s32.totalorder %s761_s17, %s757_s16 }
   0x8   : > { %p147_p2 = scmp.eq.s32.totalorder %s572_s3, 1  ;;  %p152_p3 = scmp.ne.s32.totalorder %s757_s16, %s753_s15 }
   0x9   : > { %s926_s22 = smov (%p33_p0, %s31_s22), 0  ;;  %p153_p5 = scmp.eq.s32.totalorder %s573_s21, 1 }
   0xa   : > { %p845_p4 = por %p147_p2, %p146_p1  ;;  %s131_s25 = ssub.s32 %s769_s19, %s926_s22 }
   0xb   : > { %p574_p6 = scmp.ge.s32.totalorder %s773_s20, 1  ;;  %p134_p7 = scmp.eq.s32.totalorder %s131_s25, 0 }
   0xc   : > { %p852_p8 = por %p153_p5, %p152_p3  ;;  %p160_p9 = scmp.lt.s32.totalorder %s773_s20, 3 }
   0xd   : > { %s858_s27 = scalar_select %p134_p7, %s761_s17, %s136_s23  }
   0xe   : > { %p161_p10 = pnand %p574_p6, %p160_p9  ;;  %p604_p11 = scmp.eq.s32.totalorder %s572_s3, 0 }
   0xf   : > { %s171_s30 = sshll.u32 %s914_s1, 4  ;;  %s775_s5 = smov [#allocation3]   ;;  %s172_s30 = int_to_ptr.hbm [resolvable:$true] %s171_s30 }
  0x10   : > { %p596_p12 = pneg %p161_p10  ;;  %s173_s6 = sshll.u32 %s775_s5, 4  ;;  %s174_s6 = int_to_ptr.vmem [resolvable:$true] %s173_s6 }
  0x11   : > { %s776_s7 = smov 128   ;;  %s777_s8 = smov 8  }
  0x12   : > { %p597_p13 = pnand %p604_p11, %p596_p12  ;;  %209 = sbr.rel (%p161_p10) target bundleno = 298 (0x12a), region = 36 }
  0x14   : > { %599 = dma.hbm_to_vmem [thread:$0]  (!%p597_p13), %s172_s30, 512, %s174_s6, [#allocation4], %s776_s7, %s776_s7, %s777_s8  }
  0x17   : > { %744 = dma.done.wait (%p604_p11), [#allocation4], 512  }
  0x18   : > { %746 = vsyncadd (%p604_p11), [#allocation4], 4294966784  ;;  %p242_p0 = scmp.lt.s32.totalorder %s765_s18, 1  ;;  %v778_v0 = vmov 0   ;;  %v265_v2 = vld [vmem:[#allocation3 + $0x18] sm:$0xff]  ;;  %v264_v3 = vld [vmem:[#allocation3 + $0x10] sm:$0xff]  ;;  %v254_v26 = vlaneseq }
  0x19   : > { %660 = vset.pattern.permute.xlu0 %v778_v0  ;;  %v283_v4 = vand.u32 4294901760, %v265_v2  ;;  %v285_v5 = vand.u32 4294901760, %v264_v3  ;;  %v263_v6 = vld [vmem:[#allocation3 + $0x8] sm:$0xff]  ;;  %v262_v20 = vld [vmem:[#allocation3] sm:$0xff]  ;;  %vm267_vm0 = vcmask 261120   ;;  %v779_v29 = vmov 0.0  }
  0x1a   : > { %s243_s9 = scalar_select %p242_p0, %s765_s18, 1  ;;  %v287_v7 = vand.u32 4294901760, %v263_v6  ;;  %v289_v21 = vand.u32 4294901760, %v262_v20  ;;  %v255_v27 = vand.u32 127, %v254_v26  ;;  %v266_v36 = vld [vmem:[%s915_s2] sm:$0xff] }
  0x1b   : > { %v313_v8 = vsub.f32 %v265_v2, %v283_v4  ;;  %v319_v9 = vsub.f32 %v264_v3, %v285_v5  ;;  %384 = vmatpush.msra.mxu3 %v283_v4  ;;  %284 = vmatpush.msra.mxu0 %v283_v4  ;;  %s239_s21 = sand.u32 1, %s757_s16   ;;  %s587_s25 = sshll.u32 %s765_s18, 3 }
  0x1c   : > { %s581_s10 = sshll.u32 %s243_s9, 3  ;;  %v325_v10 = vsub.f32 %v263_v6, %v287_v7  ;;  %v331_v22 = vsub.f32 %v262_v20, %v289_v21  ;;  %s580_s23 = sshll.u32 %s239_s21, 3 }
  0x1d   : > { %s248_s13 = scalar_lea.vmem %s913_s0, %s581_s10  ;;  %v314_v11 = vand.u32 4294901760, %v313_v8  ;;  %v320_v12 = vand.u32 4294901760, %v319_v9  ;;  %355 = vmatpush.msra.mxu2 %v313_v8  ;;  %386 = vmatpush.msra.mxu3 %v285_v5  ;;  %s469_s30 = scalar_lea.hbm %s917_s4, %s587_s25 }
  0x1e   : > { %v253_v1 = vld [vmem:[%s248_s13] sm:$0xff]  ;;  %v326_v13 = vand.u32 4294901760, %v325_v10  ;;  %286 = vmatpush.msra.mxu0 %v285_v5  ;;  %v332_v23 = vand.u32 4294901760, %v331_v22  ;;  %s241_s5 = scalar_lea.vmem [#allocation6], %s580_s23  ;;  %s473_s7 = sshll.u32 %s469_s30, 4  ;;  %s474_s7 = int_to_ptr.hbm [resolvable:$true] %s473_s7 }
  0x1f   : > { %257 = vperm.xlu0 %660, %v253_v1   ;;  %v315_v14 = vsub.f32 %v313_v8, %v314_v11  ;;  %v321_v15 = vsub.f32 %v319_v9, %v320_v12  ;;  %358 = vmatpush.msra.mxu2 %v319_v9  ;;  %s471_s6 = sshll.u32 %s241_s5, 4  ;;  %s458_s18 = scalar_lea.sflag [#allocation5], %s239_s21  ;;  %s472_s6 = int_to_ptr.vmem [resolvable:$true] %s471_s6 }
  0x20   : > { %388 = vmatpush.msra.mxu3 %v287_v7  ;;  %v327_v16 = vsub.f32 %v325_v10, %v326_v13  ;;  %288 = vmatpush.msra.mxu0 %v287_v7  ;;  %v333_v24 = vsub.f32 %v331_v22, %v332_v23  ;;  %s705_s8 = sshra.s32 %s474_s7, 4  ;;  %s711_s12 = scalar_lea.hbm %s917_s4, 16  ;;  %s706_s8 = int_to_ptr.hbm [resolvable:$true] %s705_s8 }
  0x21   : > { %v316_v17 = vand.u32 4294901760, %v315_v14  ;;  %v322_v18 = vand.u32 4294901760, %v321_v15  ;;  %361 = vmatpush.msra.mxu2 %v325_v10  ;;  %s707_s9 = scalar_lea.hbm %s706_s8, 8  ;;  %p712_p5 = scmp.lt.s32.totalorder %s706_s8, %s917_s4 }
  0x22   : > { %v328_v19 = vand.u32 4294901760, %v327_v16  ;;  %390 = vmatpush.msra.mxu3 %v289_v21  ;;  %290 = vmatpush.msra.mxu0 %v289_v21  ;;  %v334_v25 = vand.u32 4294901760, %v333_v24  ;;  %p708_p1 = scmp.ne.s32.totalorder %s706_s8, %s707_s9  ;;  %p713_p6 = scmp.lt.s32.totalorder %s711_s12, %s707_s9 }
  0x23   : > { %317 = vmatpush.msra.mxu1 %v316_v17  ;;  %364 = vmatpush.msra.mxu2 %v331_v22 }
  0x24   : > { %413 = vmatpush.msrb.mxu0 %v314_v11  ;;  %p709_p2 = pnand %p708_p1, %p845_p4  ;;  %p714_p7 = por %p713_p6, %p712_p5 }
  0x25   : > { %323 = vmatpush.msra.mxu1 %v322_v18 }
  0x26   : > { %417 = vmatpush.msrb.mxu0 %v320_v12  ;;  %p710_p3 = pneg %p709_p2 }
  0x27   : > { %329 = vmatpush.msra.mxu1 %v328_v19 }
  0x28   : > { %421 = vmatpush.msrb.mxu0 %v326_v13  ;;  %p715_p9 = pnand %p714_p7, %p710_p3 }
  0x29   : > { %335 = vmatpush.msra.mxu1 %v334_v25 }
  0x2a   : > { %425 = vmatpush.msrb.mxu0 %v332_v23 }
  0x2b   : > { %444 = vmatpush.msrb.mxu1 %v283_v4 }
  0x2d   : > { %446 = vmatpush.msrb.mxu1 %v285_v5 }
  0x2f   : > { %448 = vmatpush.msrb.mxu1 %v287_v7 }
  0x31   : > { %450 = vmatpush.msrb.mxu1 %v289_v21 }
  0x91   : > { %v258_v28 = vpop.permute.xlu0 %257 }
  0x92   : > { %vm259_vm1 = vcmp.eq.s32.totalorder %v258_v28, %v255_v27 }
  0x93   : > { %v582_v30 = vsel %vm259_vm1, 1.0, %v779_v29 }
  0x94   : > { %583 = vmatmul.msk.f32.vlgmr.msra.gmra.mxu1 %vm267_vm0, %v582_v30  ;;  %v269_v31 = vsel %vm267_vm0, %v582_v30, 0 }
  0x95   : > { %v292_v32 = vsub.f32 %v269_v31, %v269_v31 }
  0x97   : > { %367 = vmatmul.f32.vlgmr.msra.gmra.mxu2 %v292_v32  ;;  %v293_v33 = vand.u32 4294901760, %v292_v32 }
  0x99   : > { %394 = vmatmul.f32.vlgmr.msra.gmra.mxu3 %v293_v33  ;;  %v294_v34 = vsub.f32 %v292_v32, %v293_v33 }
  0x9b   : > { %v295_v35 = vand.u32 4294901760, %v294_v34 }
  0x9c   : > { %585 = vmatmul.msk.f32.vlgmr.msrb.gmra.mxu1 %vm267_vm0, %v582_v30 }
  0x9d   : > { %296 = vmatmul.f32.vlgmr.msra.gmra.mxu0 %v295_v35 }
  0xa5   : > { %584 = vmatmul.msk.f32.vlgmr.msrb.gmra.mxu0 %vm267_vm0, %v582_v30 }
 0x111   : > { %v338_v37 = vpop.f32.mrf.mxu1 }
 0x119   : > { %v453_v47 = vpop.f32.mrf.mxu1 }
 0x11a   : > { %v297_v38 = vpop.f32.mrf.mxu0  ;;  %v368_v41 = vpop.f32.mrf.mxu2 }
 0x11b   : > { %v298_v39 = vadd.f32 %v297_v38, %v266_v36 }
 0x11c   : > { %v395_v43 = vpop.f32.mrf.mxu3 }
 0x11d   : > { %v339_v40 = vadd.f32 %v338_v37, %v298_v39 }
 0x11f   : > { %v369_v42 = vadd.f32 %v368_v41, %v339_v40 }
 0x121   : > { %v396_v44 = vadd.f32 %v395_v43, %v369_v42 }
 0x122   : > { %v428_v45 = vpop.f32.mrf.mxu0 }
 0x123   : > { %v429_v46 = vadd.f32 %v428_v45, %v396_v44 }
 0x125   : > { %v454_v48 = vadd.f32 %v453_v47, %v429_v46 }
 0x127   : > { %456 = vst.msk [vmem:[%s241_s5] sm:$0xff] %vm267_vm0, %v454_v48 }
 0x128   : > { %718 = shalt.err (!%p715_p9)
}
 0x129   : > { %594 = dma.vmem_to_hbm [thread:$0]  (%p845_p4), %s472_s6, 128, %s474_s7, %s458_s18  }
 0x12a PF: > { %p606_p10 = scmp.ge.s32.totalorder %s773_s20, 2  ;;  %s485_s3 = sand.u32 1, %s753_s15  }
 0x12b   : > { %s486_s21 = scalar_lea.sflag [#allocation5], %s485_s3 }
 0x12c   : > { %p601_p11 = pnand %p606_p10, %p852_p8 }
 0x12e   : > { %p602_p12 = pneg %p601_p11 }
 0x130   : > { %748 = dma.done.wait (%p602_p12), %s486_s21, 128  }
 0x131   : > { %750 = vsyncadd (%p602_p12), %s486_s21, 4294967168  ;;  %s19_s20 = sadd.s32 1, %s773_s20   ;;  %s920_s15 = smov %s757_s16 }
 0x132   : > { %p16_p13 = scmp.ge.s32.totalorder %s19_s20, 4   ;;  %s921_s16 = smov %s761_s17 }
 0x133   : > { %s922_s17 = smov %s858_s27  ;;  %s923_s18 = smov %s769_s19 }
 0x134   : > { %s924_s19 = smov %s926_s22  ;;  %18 = sbr.rel (!%p16_p13) target bundleno = 5 (0x5), region = 79 }
 0x139   :  { %492 = vsyncpa [#allocation4], 1 }
 0x13a   :  { %494 = vsyncpa [#allocation4 + $0x1], 1 }
 0x13b   :  { %495 = vsyncpa [#allocation5], 1 }
 0x13c   :  { %497 = vsyncpa [#allocation5 + $0x1], 1 }

</bundles_post_ra>
